<compile_context>
chip_gen: v5e
topology: v5e:2x2
jax: 0.10.0
libtpu: 0.0.40
codegen_flags: <defaults>
</compile_context>

<pallas_src>
import functools
import math

import jax
import jax.numpy as jnp
from jax import lax
from jax.experimental import pallas as pl
from jax.experimental.pallas import tpu as pltpu


# ----------------------------- kernel math -----------------------------------

def _layer_norm(x, gamma, beta, eps=1e-5):
    # Single-pass: E[x] and E[x^2] in one sweep (fewer XLU lane reductions).
    m = jnp.mean(x, axis=-1, keepdims=True)
    m2 = jnp.mean(x * x, axis=-1, keepdims=True)
    var = m2 - m * m
    return (x - m) * lax.rsqrt(var + eps) * gamma + beta


def _gelu_exact(x):
    # nn.GELU() default is the exact erf formulation.
    return 0.5 * x * (1.0 + lax.erf(x * (1.0 / math.sqrt(2.0))))


# ------------------------------- kernel ---------------------------------------

def transformer_kernel(x_ref, vec_ref, wqkv_ref, wo_ref, w1_ref, w2_ref,
                       out_ref, x_scr, o_scr,
                       *, bt, N, D, heads, dim_head, mlp):
    layer = pl.program_id(1)
    n_layers = pl.num_programs(1)
    scale = dim_head ** -0.5
    inner = heads * dim_head
    M = bt * N

    # Load this batch tile once (layer 0); activations stay in VMEM after.
    @pl.when(layer == 0)
    def _():
        x_scr[...] = x_ref[...].reshape(M, D).astype(jnp.float32)

    x = x_scr[...]                                     # (M, D) fp32

    # Packed small per-layer params: one lane-dense block, sliced in-kernel.
    vec = vec_ref[0]                                   # (8, cpad) fp32
    ln1_w, ln1_b = vec[0:1, :D], vec[1:2, :D]
    wo_b = vec[2:3, :D]
    ln2_w, ln2_b = vec[3:4, :D], vec[4:5, :D]
    b1 = vec[5:6, :mlp]
    b2 = vec[6:7, :D]

    # ---- Residual(PreNorm(Attention)) ----
    xn = _layer_norm(x, ln1_w, ln1_b).astype(jnp.bfloat16)
    # Fused QKV projection: single (M, D) @ (D, 3*inner) bf16 matmul.
    qkv = jnp.dot(xn, wqkv_ref[0], preferred_element_type=jnp.float32)

    # TODO(synk): flash-style KV-tiled online softmax at real sequence lengths.
    for h in range(heads):                              # static loop over heads
        q = qkv[:, h * dim_head:(h + 1) * dim_head].reshape(bt, N, dim_head)
        k = qkv[:, inner + h * dim_head:
                inner + (h + 1) * dim_head].reshape(bt, N, dim_head)
        v = qkv[:, 2 * inner + h * dim_head:
                2 * inner + (h + 1) * dim_head].reshape(bt, N, dim_head)
        s = jnp.einsum('bnd,bmd->bnm',
                       q.astype(jnp.bfloat16), k.astype(jnp.bfloat16),
                       preferred_element_type=jnp.float32) * scale
        s = s - jnp.max(s, axis=-1, keepdims=True)
        e = jnp.exp(s)
        p = e * pl.reciprocal(jnp.sum(e, axis=-1, keepdims=True), approx=True)
        oh = jnp.einsum('bnm,bmd->bnd',
                        p.astype(jnp.bfloat16), v.astype(jnp.bfloat16),
                        preferred_element_type=jnp.float32)
        # Per-head columns of the (M, inner) output scratch.
        o_scr[:, h * dim_head:(h + 1) * dim_head] = oh.reshape(M, dim_head)

    # Single fused output projection: (M, inner) @ (inner, D).
    attn_out = jnp.dot(o_scr[...].astype(jnp.bfloat16), wo_ref[0],
                       preferred_element_type=jnp.float32) + wo_b
    x1 = x + attn_out

    # ---- Residual(PreNorm(FeedForward)) ----
    # TODO(synk): K/N-tile the MLP matmuls at real sizes (v7x 64 MiB VMEM).
    xn2 = _layer_norm(x1, ln2_w, ln2_b).astype(jnp.bfloat16)
    h1 = _gelu_exact(jnp.dot(xn2, w1_ref[0],
                             preferred_element_type=jnp.float32) + b1)
    y = jnp.dot(h1.astype(jnp.bfloat16), w2_ref[0],
                preferred_element_type=jnp.float32) + b2
    x2 = x1 + y

    x_scr[...] = x2                                    # carry to next layer

    @pl.when(layer == n_layers - 1)
    def _():
        out_ref[...] = x2.reshape(bt, N, D).astype(out_ref.dtype)


# ------------------------ host-side weight packing -----------------------------

def pack_params(layers, *, heads, dim_head):
    """Stack per-layer PyTorch-layout params along a leading layer axis:
    matmul weights pre-transposed + cast to bf16; the seven small 1-D params
    packed into one lane-dense (L, 8, cpad) fp32 array."""
    D = layers[0]["ln1_w"].shape[0]
    mlp = layers[0]["w1"].shape[0]
    cpad = max(128, ((max(D, mlp) + 127) // 128) * 128)

    def vec_rows(p):
        rows = [p["ln1_w"], p["ln1_b"], p["wo_b"], p["ln2_w"], p["ln2_b"],
                p["b1"], p["b2"]]
        rows = [jnp.pad(r.astype(jnp.float32), (0, cpad - r.shape[0]))
                for r in rows]
        rows.append(jnp.zeros((cpad,), jnp.float32))     # pad to 8 sublanes
        return jnp.stack(rows)                            # (8, cpad)

    packed = {
        "vec":  jnp.stack([vec_rows(p) for p in layers]),                      # (L,8,cpad) f32
        "wqkv": jnp.stack([p["wqkv"].T.astype(jnp.bfloat16) for p in layers]),  # (L,D,3*inner)
        "wo":   jnp.stack([p["wo"].T.astype(jnp.bfloat16) for p in layers]),    # (L,inner,D)
        "w1":   jnp.stack([p["w1"].T.astype(jnp.bfloat16) for p in layers]),    # (L,D,mlp)
        "w2":   jnp.stack([p["w2"].T.astype(jnp.bfloat16) for p in layers]),    # (L,mlp,D)
    }
    return packed, mlp, cpad


# ------------------------------- wrapper ---------------------------------------

def transformer_forward(x, layers, *, heads, dim_head, b_tile=None):
    B, N, D = x.shape
    L = len(layers)
    if b_tile is None:
        b_tile = B           # 1-TC chips: whole batch per tile -> weights streamed once
    assert B % b_tile == 0
    n_bt = B // b_tile       # v7x: use n_bt >= 2 so both TensorCores get work
    packed, mlp, cpad = pack_params(layers, heads=heads, dim_head=dim_head)
    inner = heads * dim_head

    in_specs = [
        pl.BlockSpec((b_tile, N, D), lambda b, l: (b, 0, 0)),      # x (per batch tile)
        pl.BlockSpec((1, 8, cpad), lambda b, l: (l, 0, 0)),        # packed 1-D params
        pl.BlockSpec((1, D, 3 * inner), lambda b, l: (l, 0, 0)),   # wqkv
        pl.BlockSpec((1, inner, D), lambda b, l: (l, 0, 0)),       # wo
        pl.BlockSpec((1, D, mlp), lambda b, l: (l, 0, 0)),         # w1
        pl.BlockSpec((1, mlp, D), lambda b, l: (l, 0, 0)),         # w2
    ]
    # Out index_map is independent of the layer axis (single writeback per tile).
    out_specs = pl.BlockSpec((b_tile, N, D), lambda b, l: (b, 0, 0))

    # Advisory cost estimate for XLA scheduling.
    flops = L * (2 * B * N * D * 3 * inner                 # fused qkv projection
                 + 2 * 2 * B * heads * N * N * dim_head    # scores + attn@v
                 + 2 * B * N * inner * D                   # output projection
                 + 2 * 2 * B * N * D * mlp)                # MLP
    transc = L * (B * heads * N * N + B * N * mlp + 4 * B * N)
    weight_bytes = sum(int(packed[k].size) * packed[k].dtype.itemsize
                       for k in ("vec", "wqkv", "wo", "w1", "w2"))
    bytes_accessed = int(2 * x.size * x.dtype.itemsize + n_bt * weight_bytes)

    kernel = functools.partial(transformer_kernel, bt=b_tile, N=N, D=D,
                               heads=heads, dim_head=dim_head, mlp=mlp)
    return pl.pallas_call(
        kernel,
        out_shape=jax.ShapeDtypeStruct((B, N, D), x.dtype),
        grid_spec=pltpu.PrefetchScalarGridSpec(
            num_scalar_prefetch=0,
            grid=(n_bt, L),                            # (batch tiles, layers)
            in_specs=in_specs,
            out_specs=out_specs,
            scratch_shapes=[pltpu.VMEM((b_tile * N, D), jnp.float32),      # residual stream
                            pltpu.VMEM((b_tile * N, inner), jnp.float32)],  # head outputs
        ),
        compiler_params=pltpu.CompilerParams(
            dimension_semantics=("parallel", "arbitrary"),
            vmem_limit_bytes=64 * 1024 * 1024),        # TODO(synk): sweep at real sizes
        cost_estimate=pl.CostEstimate(flops=int(flops),
                                      transcendentals=int(transc),
                                      bytes_accessed=bytes_accessed),
    )(x, packed["vec"], packed["wqkv"], packed["wo"], packed["w1"], packed["w2"])


# ------------------------- deterministic params --------------------------------

def init_layer_params(key, dim, heads, dim_head, mlp_dim):
    inner = heads * dim_head
    ks = jax.random.split(key, 4)
    s = 0.02
    return {
        "ln1_w": jnp.ones((dim,), jnp.float32),
        "ln1_b": jnp.zeros((dim,), jnp.float32),
        "wqkv": (s * jax.random.normal(ks[0], (3 * inner, dim))).astype(jnp.float32),
        "wo": (s * jax.random.normal(ks[1], (dim, inner))).astype(jnp.float32),
        "wo_b": jnp.zeros((dim,), jnp.float32),
        "ln2_w": jnp.ones((dim,), jnp.float32),
        "ln2_b": jnp.zeros((dim,), jnp.float32),
        "w1": (s * jax.random.normal(ks[2], (mlp_dim, dim))).astype(jnp.float32),
        "b1": jnp.zeros((mlp_dim,), jnp.float32),
        "w2": (s * jax.random.normal(ks[3], (dim, mlp_dim))).astype(jnp.float32),
        "b2": jnp.zeros((dim,), jnp.float32),
    }


# ------------------------- pure-JAX reference -----------------------------------

def _ref_layer(x, p, *, heads, dim_head):
    def ln(v, g, b):
        m = v.mean(-1, keepdims=True)
        var = ((v - m) ** 2).mean(-1, keepdims=True)
        return (v - m) / jnp.sqrt(var + 1e-5) * g + b

    B, N, D = x.shape
    inner = heads * dim_head
    xn = ln(x, p["ln1_w"], p["ln1_b"])
    qkv = xn @ p["wqkv"].T
    q, k, v = jnp.split(qkv, 3, axis=-1)

    def to_heads(t):
        return t.reshape(B, N, heads, dim_head).transpose(0, 2, 1, 3)

    q, k, v = map(to_heads, (q, k, v))
    dots = jnp.einsum("bhid,bhjd->bhij", q, k) * (dim_head ** -0.5)
    attn = jax.nn.softmax(dots, axis=-1)
    o = jnp.einsum("bhij,bhjd->bhid", attn, v)
    o = o.transpose(0, 2, 1, 3).reshape(B, N, inner)
    x1 = x + (o @ p["wo"].T + p["wo_b"])
    xn2 = ln(x1, p["ln2_w"], p["ln2_b"])
    h1 = jax.nn.gelu(xn2 @ p["w1"].T + p["b1"], approximate=False)
    return x1 + (h1 @ p["w2"].T + p["b2"])


# --------------------------------- main -----------------------------------------

if __name__ == "__main__":
    # Transformer(dim=32, depth=2, heads=4, dim_head=8, mlp_dim=64),
    # input x of shape (batch=2, seq=8, dim=32).
    B, N, D = 2, 8, 32
    HEADS, DIM_HEAD, MLP = 4, 8, 64
    DEPTH = 2

    root = jax.random.PRNGKey(0)
    kx, *layer_keys = jax.random.split(root, DEPTH + 1)
    x = jax.random.normal(kx, (B, N, D), dtype=jnp.float32)
    layers = [init_layer_params(k, D, HEADS, DIM_HEAD, MLP) for k in layer_keys]

    # b_tile=1 exercises the batch-parallel grid axis (feeds both TCs on v7x);
    # on 1-TC chips b_tile=B streams each layer's weights only once.
    out = transformer_forward(x, layers, heads=HEADS, dim_head=DIM_HEAD, b_tile=1)
    out = jax.block_until_ready(out)

    # Sanity-check against a pure-JAX fp32 reference.  Tolerance accounts for
    # the deliberate bf16 weight/activation quantization at matmul inputs.
    ref = x
    for p in layers:
        ref = _ref_layer(ref, p, heads=HEADS, dim_head=DIM_HEAD)
    assert out.shape == (B, N, D)
    err = float(jnp.max(jnp.abs(out - ref)))
    assert err < 5e-3, f"max abs err {err}"

    print("KERNEL_OK")
</pallas_src>

<mosaic_0001>
module attributes {stable_mosaic.version = 11 : i64} {
  func.func @transformer_kernel(%arg0: i32, %arg1: i32, %arg2: memref<1x8x32xf32, #tpu.memory_space<vmem>>, %arg3: memref<1x8x128xf32, #tpu.memory_space<vmem>>, %arg4: memref<1x32x96xbf16, #tpu.memory_space<vmem>>, %arg5: memref<1x32x32xbf16, #tpu.memory_space<vmem>>, %arg6: memref<1x32x64xbf16, #tpu.memory_space<vmem>>, %arg7: memref<1x64x32xbf16, #tpu.memory_space<vmem>>, %arg8: memref<1x8x32xf32, #tpu.memory_space<vmem>>, %arg9: memref<8x32xf32, #tpu.memory_space<vmem>>, %arg10: memref<8x32xf32, #tpu.memory_space<vmem>>) attributes {dimension_semantics = [#tpu.dimension_semantics<parallel>, #tpu.dimension_semantics<arbitrary>], iteration_bounds = array<i64: 2, 2>, scalar_prefetch = 0 : i64, scratch_operands = 2 : i64, tpu.core_type = #tpu.core_type<tc>, window_params = [{transform_indices = @transform_0, window_bounds = array<i64: 1, 8, 32>}, {transform_indices = @transform_1, window_bounds = array<i64: 1, 8, 128>}, {transform_indices = @transform_2, window_bounds = array<i64: 1, 32, 96>}, {transform_indices = @transform_3, window_bounds = array<i64: 1, 32, 32>}, {transform_indices = @transform_4, window_bounds = array<i64: 1, 32, 64>}, {transform_indices = @transform_5, window_bounds = array<i64: 1, 64, 32>}, {transform_indices = @transform_6, window_bounds = array<i64: 1, 8, 32>}]} {
    %c0_i32 = arith.constant 0 : i32
    %0 = arith.cmpi eq, %arg1, %c0_i32 : i32
    %1 = arith.extui %0 : i1 to i32
    %c0_i32_0 = arith.constant 0 : i32
    %2 = arith.cmpi ne, %1, %c0_i32_0 : i32
    scf.if %2 {
      %c0_63 = arith.constant 0 : index
      %c0_64 = arith.constant 0 : index
      %c0_65 = arith.constant 0 : index
      %198 = vector.load %arg2[%c0_63, %c0_64, %c0_65] : memref<1x8x32xf32, #tpu.memory_space<vmem>>, vector<1x8x32xf32>
      %199 = vector.shape_cast %198 : vector<1x8x32xf32> to vector<8x32xf32>
      %c0_66 = arith.constant 0 : index
      %c0_67 = arith.constant 0 : index
      %200 = vector.load %arg9[%c0_66, %c0_67] : memref<8x32xf32, #tpu.memory_space<vmem>>, vector<8x32xf32>
      tpu.vector_store %arg9[%c0_66, %c0_67], %199 {strides = array<i32>} : memref<8x32xf32, #tpu.memory_space<vmem>>, vector<8x32xf32>,
    } else {
    }
    %c0 = arith.constant 0 : index
    %c0_1 = arith.constant 0 : index
    %3 = vector.load %arg9[%c0, %c0_1] : memref<8x32xf32, #tpu.memory_space<vmem>>, vector<8x32xf32>
    %c0_2 = arith.constant 0 : index
    %c0_3 = arith.constant 0 : index
    %c0_4 = arith.constant 0 : index
    %4 = vector.load %arg3[%c0_2, %c0_3, %c0_4] : memref<1x8x128xf32, #tpu.memory_space<vmem>>, vector<1x8x128xf32>
    %5 = vector.shape_cast %4 : vector<1x8x128xf32> to vector<8x128xf32>
    %6 = vector.extract_strided_slice %5 {offsets = [0, 0], sizes = [1, 32], strides = [1, 1]} : vector<8x128xf32> to vector<1x32xf32>
    %7 = vector.extract_strided_slice %5 {offsets = [1, 0], sizes = [1, 32], strides = [1, 1]} : vector<8x128xf32> to vector<1x32xf32>
    %8 = vector.extract_strided_slice %5 {offsets = [2, 0], sizes = [1, 32], strides = [1, 1]} : vector<8x128xf32> to vector<1x32xf32>
    %9 = vector.extract_strided_slice %5 {offsets = [3, 0], sizes = [1, 32], strides = [1, 1]} : vector<8x128xf32> to vector<1x32xf32>
    %10 = vector.extract_strided_slice %5 {offsets = [4, 0], sizes = [1, 32], strides = [1, 1]} : vector<8x128xf32> to vector<1x32xf32>
    %11 = vector.extract_strided_slice %5 {offsets = [5, 0], sizes = [1, 64], strides = [1, 1]} : vector<8x128xf32> to vector<1x64xf32>
    %12 = vector.extract_strided_slice %5 {offsets = [6, 0], sizes = [1, 32], strides = [1, 1]} : vector<8x128xf32> to vector<1x32xf32>
    %cst = arith.constant dense<0.000000e+00> : vector<8xf32>
    %13 = vector.multi_reduction <add>, %3, %cst [1] : vector<8x32xf32> to vector<8xf32>
    %14 = vector.shape_cast %13 : vector<8xf32> to vector<8x1xf32>
    %cst_5 = arith.constant 3.200000e+01 : f32
    %15 = vector.broadcast %cst_5 : f32 to vector<8x1xf32>
    %16 = arith.divf %14, %15 : vector<8x1xf32>
    %17 = arith.mulf %3, %3 : vector<8x32xf32>
    %cst_6 = arith.constant dense<0.000000e+00> : vector<8xf32>
    %18 = vector.multi_reduction <add>, %17, %cst_6 [1] : vector<8x32xf32> to vector<8xf32>
    %19 = vector.shape_cast %18 : vector<8xf32> to vector<8x1xf32>
    %cst_7 = arith.constant 3.200000e+01 : f32
    %20 = vector.broadcast %cst_7 : f32 to vector<8x1xf32>
    %21 = arith.divf %19, %20 : vector<8x1xf32>
    %22 = arith.mulf %16, %16 : vector<8x1xf32>
    %23 = arith.subf %21, %22 : vector<8x1xf32>
    %24 = vector.broadcast %16 : vector<8x1xf32> to vector<8x32xf32>
    %25 = arith.subf %3, %24 : vector<8x32xf32>
    %cst_8 = arith.constant 9.99999974E-6 : f32
    %26 = vector.broadcast %cst_8 : f32 to vector<8x1xf32>
    %27 = arith.addf %23, %26 : vector<8x1xf32>
    %28 = math.rsqrt %27 : vector<8x1xf32>
    %29 = vector.broadcast %28 : vector<8x1xf32> to vector<8x32xf32>
    %30 = arith.mulf %25, %29 : vector<8x32xf32>
    %31 = vector.broadcast %6 : vector<1x32xf32> to vector<8x32xf32>
    %32 = arith.mulf %30, %31 : vector<8x32xf32>
    %33 = vector.broadcast %7 : vector<1x32xf32> to vector<8x32xf32>
    %34 = arith.addf %32, %33 : vector<8x32xf32>
    %35 = arith.truncf %34 : vector<8x32xf32> to vector<8x32xbf16>
    %c0_9 = arith.constant 0 : index
    %c0_10 = arith.constant 0 : index
    %c0_11 = arith.constant 0 : index
    %36 = vector.load %arg4[%c0_9, %c0_10, %c0_11] : memref<1x32x96xbf16, #tpu.memory_space<vmem>>, vector<1x32x96xbf16>
    %37 = vector.shape_cast %36 : vector<1x32x96xbf16> to vector<32x96xbf16>
    %cst_12 = arith.constant dense<0.000000e+00> : vector<8x96xf32>
    %38 = tpu.matmul %35, %37, %cst_12 {dimension_numbers = #tpu.dot_dimension_numbers<[1], [0], [0], [1], [0, 0, 1, 1], [], []>} : vector<8x32xbf16>, vector<32x96xbf16>, vector<8x96xf32> -> vector<8x96xf32>
    %39 = vector.extract_strided_slice %38 {offsets = [0, 0], sizes = [8, 8], strides = [1, 1]} : vector<8x96xf32> to vector<8x8xf32>
    %40 = vector.shape_cast %39 : vector<8x8xf32> to vector<1x8x8xf32>
    %41 = vector.extract_strided_slice %38 {offsets = [0, 32], sizes = [8, 8], strides = [1, 1]} : vector<8x96xf32> to vector<8x8xf32>
    %42 = vector.shape_cast %41 : vector<8x8xf32> to vector<1x8x8xf32>
    %43 = vector.extract_strided_slice %38 {offsets = [0, 64], sizes = [8, 8], strides = [1, 1]} : vector<8x96xf32> to vector<8x8xf32>
    %44 = vector.shape_cast %43 : vector<8x8xf32> to vector<1x8x8xf32>
    %45 = arith.truncf %40 : vector<1x8x8xf32> to vector<1x8x8xbf16>
    %46 = arith.truncf %42 : vector<1x8x8xf32> to vector<1x8x8xbf16>
    "tpu.trace_start"() <{level = 10 : i32, message = "bnd,bmd->bnm"}> : () -> ()
    %cst_13 = arith.constant dense<0.000000e+00> : vector<1x8x8xf32>
    %47 = tpu.matmul %45, %46, %cst_13 {dimension_numbers = #tpu.dot_dimension_numbers<[2], [2], [1], [1], [0, 0, 0, 1, 1, 1], [0], [0]>} : vector<1x8x8xbf16>, vector<1x8x8xbf16>, vector<1x8x8xf32> -> vector<1x8x8xf32>
    "tpu.trace_stop"() : () -> ()
    %cst_14 = arith.constant 0.353553385 : f32
    %48 = vector.broadcast %cst_14 : f32 to vector<1x8x8xf32>
    %49 = arith.mulf %47, %48 : vector<1x8x8xf32>
    %cst_15 = arith.constant dense<0xFF800000> : vector<1x8xf32>
    %50 = vector.multi_reduction <maximumf>, %49, %cst_15 [2] : vector<1x8x8xf32> to vector<1x8xf32>
    %51 = vector.shape_cast %50 : vector<1x8xf32> to vector<1x8x1xf32>
    %52 = vector.broadcast %51 : vector<1x8x1xf32> to vector<1x8x8xf32>
    %53 = arith.subf %49, %52 : vector<1x8x8xf32>
    %54 = math.exp %53 : vector<1x8x8xf32>
    %cst_16 = arith.constant dense<0.000000e+00> : vector<1x8xf32>
    %55 = vector.multi_reduction <add>, %54, %cst_16 [2] : vector<1x8x8xf32> to vector<1x8xf32>
    %56 = vector.shape_cast %55 : vector<1x8xf32> to vector<1x8x1xf32>
    %57 = tpu.reciprocal %56 {approx = true} : vector<1x8x1xf32> -> vector<1x8x1xf32>
    %58 = vector.broadcast %57 : vector<1x8x1xf32> to vector<1x8x8xf32>
    %59 = arith.mulf %54, %58 : vector<1x8x8xf32>
    %60 = arith.truncf %59 : vector<1x8x8xf32> to vector<1x8x8xbf16>
    %61 = arith.truncf %44 : vector<1x8x8xf32> to vector<1x8x8xbf16>
    "tpu.trace_start"() <{level = 10 : i32, message = "bnm,bmd->bnd"}> : () -> ()
    %cst_17 = arith.constant dense<0.000000e+00> : vector<1x8x8xf32>
    %62 = tpu.matmul %60, %61, %cst_17 {dimension_numbers = #tpu.dot_dimension_numbers<[2], [1], [1], [2], [0, 0, 0, 1, 1, 2], [0], [0]>} : vector<1x8x8xbf16>, vector<1x8x8xbf16>, vector<1x8x8xf32> -> vector<1x8x8xf32>
    "tpu.trace_stop"() : () -> ()
    %63 = vector.shape_cast %62 : vector<1x8x8xf32> to vector<8x8xf32>
    %c0_18 = arith.constant 0 : index
    %c0_19 = arith.constant 0 : index
    %64 = vector.load %arg10[%c0_18, %c0_19] : memref<8x32xf32, #tpu.memory_space<vmem>>, vector<8x8xf32>
    tpu.vector_store %arg10[%c0_18, %c0_19], %63 {strides = array<i32>} : memref<8x32xf32, #tpu.memory_space<vmem>>, vector<8x8xf32>,
    %65 = vector.extract_strided_slice %38 {offsets = [0, 8], sizes = [8, 8], strides = [1, 1]} : vector<8x96xf32> to vector<8x8xf32>
    %66 = vector.shape_cast %65 : vector<8x8xf32> to vector<1x8x8xf32>
    %67 = vector.extract_strided_slice %38 {offsets = [0, 40], sizes = [8, 8], strides = [1, 1]} : vector<8x96xf32> to vector<8x8xf32>
    %68 = vector.shape_cast %67 : vector<8x8xf32> to vector<1x8x8xf32>
    %69 = vector.extract_strided_slice %38 {offsets = [0, 72], sizes = [8, 8], strides = [1, 1]} : vector<8x96xf32> to vector<8x8xf32>
    %70 = vector.shape_cast %69 : vector<8x8xf32> to vector<1x8x8xf32>
    %71 = arith.truncf %66 : vector<1x8x8xf32> to vector<1x8x8xbf16>
    %72 = arith.truncf %68 : vector<1x8x8xf32> to vector<1x8x8xbf16>
    "tpu.trace_start"() <{level = 10 : i32, message = "bnd,bmd->bnm"}> : () -> ()
    %cst_20 = arith.constant dense<0.000000e+00> : vector<1x8x8xf32>
    %73 = tpu.matmul %71, %72, %cst_20 {dimension_numbers = #tpu.dot_dimension_numbers<[2], [2], [1], [1], [0, 0, 0, 1, 1, 1], [0], [0]>} : vector<1x8x8xbf16>, vector<1x8x8xbf16>, vector<1x8x8xf32> -> vector<1x8x8xf32>
    "tpu.trace_stop"() : () -> ()
    %cst_21 = arith.constant 0.353553385 : f32
    %74 = vector.broadcast %cst_21 : f32 to vector<1x8x8xf32>
    %75 = arith.mulf %73, %74 : vector<1x8x8xf32>
    %cst_22 = arith.constant dense<0xFF800000> : vector<1x8xf32>
    %76 = vector.multi_reduction <maximumf>, %75, %cst_22 [2] : vector<1x8x8xf32> to vector<1x8xf32>
    %77 = vector.shape_cast %76 : vector<1x8xf32> to vector<1x8x1xf32>
    %78 = vector.broadcast %77 : vector<1x8x1xf32> to vector<1x8x8xf32>
    %79 = arith.subf %75, %78 : vector<1x8x8xf32>
    %80 = math.exp %79 : vector<1x8x8xf32>
    %cst_23 = arith.constant dense<0.000000e+00> : vector<1x8xf32>
    %81 = vector.multi_reduction <add>, %80, %cst_23 [2] : vector<1x8x8xf32> to vector<1x8xf32>
    %82 = vector.shape_cast %81 : vector<1x8xf32> to vector<1x8x1xf32>
    %83 = tpu.reciprocal %82 {approx = true} : vector<1x8x1xf32> -> vector<1x8x1xf32>
    %84 = vector.broadcast %83 : vector<1x8x1xf32> to vector<1x8x8xf32>
    %85 = arith.mulf %80, %84 : vector<1x8x8xf32>
    %86 = arith.truncf %85 : vector<1x8x8xf32> to vector<1x8x8xbf16>
    %87 = arith.truncf %70 : vector<1x8x8xf32> to vector<1x8x8xbf16>
    "tpu.trace_start"() <{level = 10 : i32, message = "bnm,bmd->bnd"}> : () -> ()
    %cst_24 = arith.constant dense<0.000000e+00> : vector<1x8x8xf32>
    %88 = tpu.matmul %86, %87, %cst_24 {dimension_numbers = #tpu.dot_dimension_numbers<[2], [1], [1], [2], [0, 0, 0, 1, 1, 2], [0], [0]>} : vector<1x8x8xbf16>, vector<1x8x8xbf16>, vector<1x8x8xf32> -> vector<1x8x8xf32>
    "tpu.trace_stop"() : () -> ()
    %89 = vector.shape_cast %88 : vector<1x8x8xf32> to vector<8x8xf32>
    %c0_25 = arith.constant 0 : index
    %c8 = arith.constant 8 : index
    %90 = vector.load %arg10[%c0_25, %c8] : memref<8x32xf32, #tpu.memory_space<vmem>>, vector<8x8xf32>
    tpu.vector_store %arg10[%c0_25, %c8], %89 {strides = array<i32>} : memref<8x32xf32, #tpu.memory_space<vmem>>, vector<8x8xf32>,
    %91 = vector.extract_strided_slice %38 {offsets = [0, 16], sizes = [8, 8], strides = [1, 1]} : vector<8x96xf32> to vector<8x8xf32>
    %92 = vector.shape_cast %91 : vector<8x8xf32> to vector<1x8x8xf32>
    %93 = vector.extract_strided_slice %38 {offsets = [0, 48], sizes = [8, 8], strides = [1, 1]} : vector<8x96xf32> to vector<8x8xf32>
    %94 = vector.shape_cast %93 : vector<8x8xf32> to vector<1x8x8xf32>
    %95 = vector.extract_strided_slice %38 {offsets = [0, 80], sizes = [8, 8], strides = [1, 1]} : vector<8x96xf32> to vector<8x8xf32>
    %96 = vector.shape_cast %95 : vector<8x8xf32> to vector<1x8x8xf32>
    %97 = arith.truncf %92 : vector<1x8x8xf32> to vector<1x8x8xbf16>
    %98 = arith.truncf %94 : vector<1x8x8xf32> to vector<1x8x8xbf16>
    "tpu.trace_start"() <{level = 10 : i32, message = "bnd,bmd->bnm"}> : () -> ()
    %cst_26 = arith.constant dense<0.000000e+00> : vector<1x8x8xf32>
    %99 = tpu.matmul %97, %98, %cst_26 {dimension_numbers = #tpu.dot_dimension_numbers<[2], [2], [1], [1], [0, 0, 0, 1, 1, 1], [0], [0]>} : vector<1x8x8xbf16>, vector<1x8x8xbf16>, vector<1x8x8xf32> -> vector<1x8x8xf32>
    "tpu.trace_stop"() : () -> ()
    %cst_27 = arith.constant 0.353553385 : f32
    %100 = vector.broadcast %cst_27 : f32 to vector<1x8x8xf32>
    %101 = arith.mulf %99, %100 : vector<1x8x8xf32>
    %cst_28 = arith.constant dense<0xFF800000> : vector<1x8xf32>
    %102 = vector.multi_reduction <maximumf>, %101, %cst_28 [2] : vector<1x8x8xf32> to vector<1x8xf32>
    %103 = vector.shape_cast %102 : vector<1x8xf32> to vector<1x8x1xf32>
    %104 = vector.broadcast %103 : vector<1x8x1xf32> to vector<1x8x8xf32>
    %105 = arith.subf %101, %104 : vector<1x8x8xf32>
    %106 = math.exp %105 : vector<1x8x8xf32>
    %cst_29 = arith.constant dense<0.000000e+00> : vector<1x8xf32>
    %107 = vector.multi_reduction <add>, %106, %cst_29 [2] : vector<1x8x8xf32> to vector<1x8xf32>
    %108 = vector.shape_cast %107 : vector<1x8xf32> to vector<1x8x1xf32>
    %109 = tpu.reciprocal %108 {approx = true} : vector<1x8x1xf32> -> vector<1x8x1xf32>
    %110 = vector.broadcast %109 : vector<1x8x1xf32> to vector<1x8x8xf32>
    %111 = arith.mulf %106, %110 : vector<1x8x8xf32>
    %112 = arith.truncf %111 : vector<1x8x8xf32> to vector<1x8x8xbf16>
    %113 = arith.truncf %96 : vector<1x8x8xf32> to vector<1x8x8xbf16>
    "tpu.trace_start"() <{level = 10 : i32, message = "bnm,bmd->bnd"}> : () -> ()
    %cst_30 = arith.constant dense<0.000000e+00> : vector<1x8x8xf32>
    %114 = tpu.matmul %112, %113, %cst_30 {dimension_numbers = #tpu.dot_dimension_numbers<[2], [1], [1], [2], [0, 0, 0, 1, 1, 2], [0], [0]>} : vector<1x8x8xbf16>, vector<1x8x8xbf16>, vector<1x8x8xf32> -> vector<1x8x8xf32>
    "tpu.trace_stop"() : () -> ()
    %115 = vector.shape_cast %114 : vector<1x8x8xf32> to vector<8x8xf32>
    %c0_31 = arith.constant 0 : index
    %c16 = arith.constant 16 : index
    %116 = vector.load %arg10[%c0_31, %c16] : memref<8x32xf32, #tpu.memory_space<vmem>>, vector<8x8xf32>
    tpu.vector_store %arg10[%c0_31, %c16], %115 {strides = array<i32>} : memref<8x32xf32, #tpu.memory_space<vmem>>, vector<8x8xf32>,
    %117 = vector.extract_strided_slice %38 {offsets = [0, 24], sizes = [8, 8], strides = [1, 1]} : vector<8x96xf32> to vector<8x8xf32>
    %118 = vector.shape_cast %117 : vector<8x8xf32> to vector<1x8x8xf32>
    %119 = vector.extract_strided_slice %38 {offsets = [0, 56], sizes = [8, 8], strides = [1, 1]} : vector<8x96xf32> to vector<8x8xf32>
    %120 = vector.shape_cast %119 : vector<8x8xf32> to vector<1x8x8xf32>
    %121 = vector.extract_strided_slice %38 {offsets = [0, 88], sizes = [8, 8], strides = [1, 1]} : vector<8x96xf32> to vector<8x8xf32>
    %122 = vector.shape_cast %121 : vector<8x8xf32> to vector<1x8x8xf32>
    %123 = arith.truncf %118 : vector<1x8x8xf32> to vector<1x8x8xbf16>
    %124 = arith.truncf %120 : vector<1x8x8xf32> to vector<1x8x8xbf16>
    "tpu.trace_start"() <{level = 10 : i32, message = "bnd,bmd->bnm"}> : () -> ()
    %cst_32 = arith.constant dense<0.000000e+00> : vector<1x8x8xf32>
    %125 = tpu.matmul %123, %124, %cst_32 {dimension_numbers = #tpu.dot_dimension_numbers<[2], [2], [1], [1], [0, 0, 0, 1, 1, 1], [0], [0]>} : vector<1x8x8xbf16>, vector<1x8x8xbf16>, vector<1x8x8xf32> -> vector<1x8x8xf32>
    "tpu.trace_stop"() : () -> ()
    %cst_33 = arith.constant 0.353553385 : f32
    %126 = vector.broadcast %cst_33 : f32 to vector<1x8x8xf32>
    %127 = arith.mulf %125, %126 : vector<1x8x8xf32>
    %cst_34 = arith.constant dense<0xFF800000> : vector<1x8xf32>
    %128 = vector.multi_reduction <maximumf>, %127, %cst_34 [2] : vector<1x8x8xf32> to vector<1x8xf32>
    %129 = vector.shape_cast %128 : vector<1x8xf32> to vector<1x8x1xf32>
    %130 = vector.broadcast %129 : vector<1x8x1xf32> to vector<1x8x8xf32>
    %131 = arith.subf %127, %130 : vector<1x8x8xf32>
    %132 = math.exp %131 : vector<1x8x8xf32>
    %cst_35 = arith.constant dense<0.000000e+00> : vector<1x8xf32>
    %133 = vector.multi_reduction <add>, %132, %cst_35 [2] : vector<1x8x8xf32> to vector<1x8xf32>
    %134 = vector.shape_cast %133 : vector<1x8xf32> to vector<1x8x1xf32>
    %135 = tpu.reciprocal %134 {approx = true} : vector<1x8x1xf32> -> vector<1x8x1xf32>
    %136 = vector.broadcast %135 : vector<1x8x1xf32> to vector<1x8x8xf32>
    %137 = arith.mulf %132, %136 : vector<1x8x8xf32>
    %138 = arith.truncf %137 : vector<1x8x8xf32> to vector<1x8x8xbf16>
    %139 = arith.truncf %122 : vector<1x8x8xf32> to vector<1x8x8xbf16>
    "tpu.trace_start"() <{level = 10 : i32, message = "bnm,bmd->bnd"}> : () -> ()
    %cst_36 = arith.constant dense<0.000000e+00> : vector<1x8x8xf32>
    %140 = tpu.matmul %138, %139, %cst_36 {dimension_numbers = #tpu.dot_dimension_numbers<[2], [1], [1], [2], [0, 0, 0, 1, 1, 2], [0], [0]>} : vector<1x8x8xbf16>, vector<1x8x8xbf16>, vector<1x8x8xf32> -> vector<1x8x8xf32>
    "tpu.trace_stop"() : () -> ()
    %141 = vector.shape_cast %140 : vector<1x8x8xf32> to vector<8x8xf32>
    %c0_37 = arith.constant 0 : index
    %c24 = arith.constant 24 : index
    %142 = vector.load %arg10[%c0_37, %c24] : memref<8x32xf32, #tpu.memory_space<vmem>>, vector<8x8xf32>
    tpu.vector_store %arg10[%c0_37, %c24], %141 {strides = array<i32>} : memref<8x32xf32, #tpu.memory_space<vmem>>, vector<8x8xf32>,
    %c0_38 = arith.constant 0 : index
    %c0_39 = arith.constant 0 : index
    %143 = vector.load %arg10[%c0_38, %c0_39] : memref<8x32xf32, #tpu.memory_space<vmem>>, vector<8x32xf32>
    %144 = arith.truncf %143 : vector<8x32xf32> to vector<8x32xbf16>
    %c0_40 = arith.constant 0 : index
    %c0_41 = arith.constant 0 : index
    %c0_42 = arith.constant 0 : index
    %145 = vector.load %arg5[%c0_40, %c0_41, %c0_42] : memref<1x32x32xbf16, #tpu.memory_space<vmem>>, vector<1x32x32xbf16>
    %146 = vector.shape_cast %145 : vector<1x32x32xbf16> to vector<32x32xbf16>
    %cst_43 = arith.constant dense<0.000000e+00> : vector<8x32xf32>
    %147 = tpu.matmul %144, %146, %cst_43 {dimension_numbers = #tpu.dot_dimension_numbers<[1], [0], [0], [1], [0, 0, 1, 1], [], []>} : vector<8x32xbf16>, vector<32x32xbf16>, vector<8x32xf32> -> vector<8x32xf32>
    %148 = vector.broadcast %8 : vector<1x32xf32> to vector<8x32xf32>
    %149 = arith.addf %147, %148 : vector<8x32xf32>
    %150 = arith.addf %3, %149 : vector<8x32xf32>
    %cst_44 = arith.constant dense<0.000000e+00> : vector<8xf32>
    %151 = vector.multi_reduction <add>, %150, %cst_44 [1] : vector<8x32xf32> to vector<8xf32>
    %152 = vector.shape_cast %151 : vector<8xf32> to vector<8x1xf32>
    %cst_45 = arith.constant 3.200000e+01 : f32
    %153 = vector.broadcast %cst_45 : f32 to vector<8x1xf32>
    %154 = arith.divf %152, %153 : vector<8x1xf32>
    %155 = arith.mulf %150, %150 : vector<8x32xf32>
    %cst_46 = arith.constant dense<0.000000e+00> : vector<8xf32>
    %156 = vector.multi_reduction <add>, %155, %cst_46 [1] : vector<8x32xf32> to vector<8xf32>
    %157 = vector.shape_cast %156 : vector<8xf32> to vector<8x1xf32>
    %cst_47 = arith.constant 3.200000e+01 : f32
    %158 = vector.broadcast %cst_47 : f32 to vector<8x1xf32>
    %159 = arith.divf %157, %158 : vector<8x1xf32>
    %160 = arith.mulf %154, %154 : vector<8x1xf32>
    %161 = arith.subf %159, %160 : vector<8x1xf32>
    %162 = vector.broadcast %154 : vector<8x1xf32> to vector<8x32xf32>
    %163 = arith.subf %150, %162 : vector<8x32xf32>
    %cst_48 = arith.constant 9.99999974E-6 : f32
    %164 = vector.broadcast %cst_48 : f32 to vector<8x1xf32>
    %165 = arith.addf %161, %164 : vector<8x1xf32>
    %166 = math.rsqrt %165 : vector<8x1xf32>
    %167 = vector.broadcast %166 : vector<8x1xf32> to vector<8x32xf32>
    %168 = arith.mulf %163, %167 : vector<8x32xf32>
    %169 = vector.broadcast %9 : vector<1x32xf32> to vector<8x32xf32>
    %170 = arith.mulf %168, %169 : vector<8x32xf32>
    %171 = vector.broadcast %10 : vector<1x32xf32> to vector<8x32xf32>
    %172 = arith.addf %170, %171 : vector<8x32xf32>
    %173 = arith.truncf %172 : vector<8x32xf32> to vector<8x32xbf16>
    %c0_49 = arith.constant 0 : index
    %c0_50 = arith.constant 0 : index
    %c0_51 = arith.constant 0 : index
    %174 = vector.load %arg6[%c0_49, %c0_50, %c0_51] : memref<1x32x64xbf16, #tpu.memory_space<vmem>>, vector<1x32x64xbf16>
    %175 = vector.shape_cast %174 : vector<1x32x64xbf16> to vector<32x64xbf16>
    %cst_52 = arith.constant dense<0.000000e+00> : vector<8x64xf32>
    %176 = tpu.matmul %173, %175, %cst_52 {dimension_numbers = #tpu.dot_dimension_numbers<[1], [0], [0], [1], [0, 0, 1, 1], [], []>} : vector<8x32xbf16>, vector<32x64xbf16>, vector<8x64xf32> -> vector<8x64xf32>
    %177 = vector.broadcast %11 : vector<1x64xf32> to vector<8x64xf32>
    %178 = arith.addf %176, %177 : vector<8x64xf32>
    %cst_53 = arith.constant 5.000000e-01 : f32
    %179 = vector.broadcast %cst_53 : f32 to vector<8x64xf32>
    %180 = arith.mulf %179, %178 : vector<8x64xf32>
    %cst_54 = arith.constant 0.707106769 : f32
    %181 = vector.broadcast %cst_54 : f32 to vector<8x64xf32>
    %182 = arith.mulf %178, %181 : vector<8x64xf32>
    %183 = math.erf %182 : vector<8x64xf32>
    %cst_55 = arith.constant 1.000000e+00 : f32
    %184 = vector.broadcast %cst_55 : f32 to vector<8x64xf32>
    %185 = arith.addf %184, %183 : vector<8x64xf32>
    %186 = arith.mulf %180, %185 : vector<8x64xf32>
    %187 = arith.truncf %186 : vector<8x64xf32> to vector<8x64xbf16>
    %c0_56 = arith.constant 0 : index
    %c0_57 = arith.constant 0 : index
    %c0_58 = arith.constant 0 : index
    %188 = vector.load %arg7[%c0_56, %c0_57, %c0_58] : memref<1x64x32xbf16, #tpu.memory_space<vmem>>, vector<1x64x32xbf16>
    %189 = vector.shape_cast %188 : vector<1x64x32xbf16> to vector<64x32xbf16>
    %cst_59 = arith.constant dense<0.000000e+00> : vector<8x32xf32>
    %190 = tpu.matmul %187, %189, %cst_59 {dimension_numbers = #tpu.dot_dimension_numbers<[1], [0], [0], [1], [0, 0, 1, 1], [], []>} : vector<8x64xbf16>, vector<64x32xbf16>, vector<8x32xf32> -> vector<8x32xf32>
    %191 = vector.broadcast %12 : vector<1x32xf32> to vector<8x32xf32>
    %192 = arith.addf %190, %191 : vector<8x32xf32>
    %193 = arith.addf %150, %192 : vector<8x32xf32>
    %c0_60 = arith.constant 0 : index
    %c0_61 = arith.constant 0 : index
    %194 = vector.load %arg9[%c0_60, %c0_61] : memref<8x32xf32, #tpu.memory_space<vmem>>, vector<8x32xf32>
    tpu.vector_store %arg9[%c0_60, %c0_61], %193 {strides = array<i32>} : memref<8x32xf32, #tpu.memory_space<vmem>>, vector<8x32xf32>,
    %c1_i32 = arith.constant 1 : i32
    %195 = arith.cmpi eq, %arg1, %c1_i32 : i32
    %196 = arith.extui %195 : i1 to i32
    %c0_i32_62 = arith.constant 0 : i32
    %197 = arith.cmpi ne, %196, %c0_i32_62 : i32
    scf.if %197 {
      %198 = vector.shape_cast %193 : vector<8x32xf32> to vector<1x8x32xf32>
      %c0_63 = arith.constant 0 : index
      %c0_64 = arith.constant 0 : index
      %c0_65 = arith.constant 0 : index
      %199 = vector.load %arg8[%c0_63, %c0_64, %c0_65] : memref<1x8x32xf32, #tpu.memory_space<vmem>>, vector<1x8x32xf32>
      tpu.vector_store %arg8[%c0_63, %c0_64, %c0_65], %198 {strides = array<i32>} : memref<1x8x32xf32, #tpu.memory_space<vmem>>, vector<1x8x32xf32>,
    } else {
    }
    return
  }
  func.func @transform_0(%arg0: i32, %arg1: i32) -> (i32, i32, i32) {
    %c0_i32 = arith.constant 0 : i32
    %c0_i32_0 = arith.constant 0 : i32
    %c0_i32_1 = arith.constant 0 : i32
    return %arg0, %c0_i32, %c0_i32_0 : i32, i32, i32
  }
  func.func @transform_1(%arg0: i32, %arg1: i32) -> (i32, i32, i32) {
    %c0_i32 = arith.constant 0 : i32
    %c0_i32_0 = arith.constant 0 : i32
    %c0_i32_1 = arith.constant 0 : i32
    return %arg1, %c0_i32, %c0_i32_0 : i32, i32, i32
  }
  func.func @transform_2(%arg0: i32, %arg1: i32) -> (i32, i32, i32) {
    %c0_i32 = arith.constant 0 : i32
    %c0_i32_0 = arith.constant 0 : i32
    %c0_i32_1 = arith.constant 0 : i32
    return %arg1, %c0_i32, %c0_i32_0 : i32, i32, i32
  }
  func.func @transform_3(%arg0: i32, %arg1: i32) -> (i32, i32, i32) {
    %c0_i32 = arith.constant 0 : i32
    %c0_i32_0 = arith.constant 0 : i32
    %c0_i32_1 = arith.constant 0 : i32
    return %arg1, %c0_i32, %c0_i32_0 : i32, i32, i32
  }
  func.func @transform_4(%arg0: i32, %arg1: i32) -> (i32, i32, i32) {
    %c0_i32 = arith.constant 0 : i32
    %c0_i32_0 = arith.constant 0 : i32
    %c0_i32_1 = arith.constant 0 : i32
    return %arg1, %c0_i32, %c0_i32_0 : i32, i32, i32
  }
  func.func @transform_5(%arg0: i32, %arg1: i32) -> (i32, i32, i32) {
    %c0_i32 = arith.constant 0 : i32
    %c0_i32_0 = arith.constant 0 : i32
    %c0_i32_1 = arith.constant 0 : i32
    return %arg1, %c0_i32, %c0_i32_0 : i32, i32, i32
  }
  func.func @transform_6(%arg0: i32, %arg1: i32) -> (i32, i32, i32) {
    %c0_i32 = arith.constant 0 : i32
    %c0_i32_0 = arith.constant 0 : i32
    %c0_i32_1 = arith.constant 0 : i32
    return %arg0, %c0_i32, %c0_i32_0 : i32, i32, i32
  }
}

</mosaic_0001>

<bundles_post_ra>
// kernel: tpu_custom_call.1
= control target key start
LH: loop header
LB: loop body
LE: loop exit
PB: predicated region body
PF: predicated region fallthrough
CT: control target
= control target key end

     0   :  { %s1895_s0 = inlined_call_operand.hbm [shape: f32[2,8,32], index: 0, kind: input, shape index: {}]   ;;  %s1896_s1 = inlined_call_operand.hbm [shape: f32[2,8,128], index: 1, kind: input, shape index: {}]   ;;  %s1897_s2 = inlined_call_operand.vmem [shape: bf16[2,32,96], index: 2, kind: input, shape index: {}]   ;;  %s1898_s3 = inlined_call_operand.vmem [shape: bf16[2,32,32], index: 3, kind: input, shape index: {}]   ;;  %s1899_s4 = inlined_call_operand.vmem [shape: bf16[2,32,64], index: 4, kind: input, shape index: {}]   ;;  %s1900_s5 = inlined_call_operand.vmem [shape: bf16[2,64,32], index: 5, kind: input, shape index: {}]   ;;  %s1901_s6 = inlined_call_operand.hbm [shape: f32[2,8,32], index: 6, kind: output, shape index: {}]  }
   0x1   :  { %1911 = sst [smem:[#allocation21_spill]] %s1895_s0 }
   0x2   :  { %1912 = sst [smem:[#allocation22_spill]] %s1896_s1 }
   0x3   :  { %1913 = sst [smem:[#allocation23_spill]] %s1900_s5 }
   0x4   :  { %1914 = sst [smem:[#allocation24_spill]] %s1901_s6 }
   0x5   :  { %11 = vsyncpa [#allocation5], 0 }
   0x6   :  { %13 = vsyncpa [#allocation5 + $0x1], 0 }
   0x7   :  { %14 = vsyncpa [#allocation8], 0 }
   0x8   :  { %16 = vsyncpa [#allocation8 + $0x1], 0 }
   0x9   :  { %17 = vsyncpa [#allocation6], 0 }
   0xa   :  { %19 = vsyncpa [#allocation6 + $0x1], 0  ;;  %s1575_s21 = smov 0   ;;  %s1577_s22 = smov 0  }
   0xb   :  { %s1579_s23 = smov 0   ;;  %s1581_s24 = smov 0  }
   0xc   :  { %s1583_s25 = smov 0   ;;  %s1585_s26 = smov 0  }
   0xd   :  { %s1587_s27 = smov 0   ;;  %s1589_s28 = smov 0  }
   0xe   :  { %s1591_s29 = smov 0   ;;  %s1593_s30 = smov 0  }
   0xf   :  { %s1595_s7 = smov 0  }
  0x10 LB: > { %1915 = sst [smem:[#allocation13_spill]] %s1495_s24  ;;  %s1098_s8 = sadd.s32 4294967295, %s1523_s7   ;;  %s1523_s7 = sphi %s1595_s7, %s25_s7   ;;  %s1519_s30 = sphi %s1593_s30, %s1945_s30   ;;  %s1515_s29 = sphi %s1591_s29, %s1944_s29   ;;  %s1511_s28 = sphi %s1589_s28, %s1943_s28   ;;  %s1507_s27 = sphi %s1587_s27, %s1942_s27   ;;  %s1503_s26 = sphi %s1585_s26, %s1951_s26   ;;  %s1499_s25 = sphi %s1583_s25, %s1950_s25   ;;  %s1495_s24 = sphi %s1581_s24, %s1949_s24   ;;  %s1491_s23 = sphi %s1579_s23, %s1948_s23   ;;  %s1487_s22 = sphi %s1577_s22, %s1947_s22   ;;  %s1483_s21 = sphi %s1575_s21, %s1946_s21  }
  0x11   : > { %1916 = sst [smem:[#allocation14_spill]] %s1511_s28  ;;  %s1099_s9 = sadd.s32 4294967294, %s1523_s7  }
  0x12   : > { %1917 = sst [smem:[#allocation15_spill]] %s1515_s29  ;;  %p51_p0 = scmp.ne.s32.totalorder %s1503_s26, %s1499_s25 }
  0x13   : > { %1918 = sst [smem:[#allocation16_spill]] %s1519_s30  ;;  %p52_p1 = scmp.eq.s32.totalorder %s1523_s7, 0 }
  0x14   : > { %p57_p2 = scmp.ne.s32.totalorder %s1499_s25, %s1495_s24  ;;  %p1639_p3 = scmp.eq.s32.totalorder %s1098_s8, 0 }
  0x15   : > { %p1645_p4 = por %p52_p1, %p51_p0  ;;  %p211_p5 = scmp.eq.s32.totalorder %s1098_s8, 3 }
  0x16   : > { %p1651_p6 = por %p1639_p3, %p57_p2  ;;  %p217_p7 = scmp.eq.s32.totalorder %s1099_s9, 3 }
  0x17   : > { %p1655_p8 = por %p211_p5, %p51_p0  ;;  %p1208_p10 = scmp.lt.s32.totalorder %s1523_s7, 4 }
  0x18   : > { %p1659_p9 = por %p217_p7, %p57_p2  ;;  %s237_s17 = sand.u32 1, %s1503_s26  }
  0x19   : > { %s1922_s15 = scalar_select %p1655_p8, 1, 0 }
  0x1a   : > { %s1924_s16 = scalar_select %p1659_p9, 1, 0 }
  0x1b   : > { %1923 = sst [smem:[#allocation17_spill]] %s1922_s15  ;;  %s1103_s18 = sshll.u32 %s1519_s30, 3 }
  0x1c   : > { %1925 = sst [smem:[#allocation18_spill]] %s1924_s16  ;;  %s1102_s19 = sshll.u32 %s237_s17, 3 }
  0x1d   : > { %s1926_s0 = sld [smem:[#allocation21_spill]]  ;;  %s241_s10 = scalar_lea.vmem [#allocation4], %s1102_s19 }
  0x1e   : > { %s249_s24 = sshll.u32 %s241_s10, 4  ;;  %p1198_p11 = pnand %p1208_p10, %p1645_p4  ;;  %s250_s24 = int_to_ptr.vmem [resolvable:$true] %s249_s24 }
  0x1f   : > { %p1106_p12 = scmp.ge.s32.totalorder %s1523_s7, 1  ;;  %p305_p13 = scmp.lt.s32.totalorder %s1523_s7, 5 }
  0x20   : > { %s238_s20 = scalar_lea.sflag [#allocation5], %s237_s17  ;;  %s34_s10 = sadd.s32 1, %s1515_s29 }
  0x21   : > { %p1675_p0 = pnand %p1106_p12, %p305_p13  ;;  %p35_p2 = scmp.ge.s32.totalorder %s34_s10, 2 }
  0x22   : > { %s70_s19 = sadd.s32 1, %s1491_s23  ;;  %p77_p5 = scmp.ne.s32.totalorder %s1491_s23, %s1487_s22 }
  0x23   : > { %s245_s9 = scalar_lea.hbm %s1926_s0, %s1103_s18  ;;  %p83_p4 = scmp.ne.s32.totalorder %s1487_s22, %s1483_s21 }
  0x24   : > { %s247_s11 = sshll.u32 %s245_s9, 4  ;;  %s1953_s10 = smov (%p35_p2, %s34_s10), 0  ;;  %s248_s11 = int_to_ptr.hbm [resolvable:$true] %s247_s11 }
  0x25   : > { %1200 = dma.hbm_to_vmem [thread:$0]  (!%p1198_p11), %s248_s11, 128, %s250_s24, %s238_s20  }
  0x26   : > { %1928 = sst [smem:[#allocation19_spill]] %s1953_s10  ;;  %s1929_s13 = sadd.s32 1, %s1519_s30 }
  0x27   : > { %s1955_s13 = smov (!%p35_p2, %s1929_s13), %s1519_s30  ;;  %s67_s24 = ssub.s32 %s1515_s29, %s1953_s10 }
  0x28   : > { %p1694_p7 = por %p77_p5, %p52_p1  ;;  %p39_p11 = scmp.ge.s32.totalorder %s1955_s13, 2 }
  0x29   : > { %p68_p12 = scmp.eq.s32.totalorder %s67_s24, 0  ;;  %p1700_p13 = por %p83_p4, %p1639_p3 }
  0x2a   : > { %s256_s21 = sand.u32 1, %s1491_s23   ;;  %s1957_s13 = smov (%p39_p11, %s1955_s13), 0 }
  0x2b   : > { %1932 = sst [smem:[#allocation20_spill]] %s1957_s13  ;;  %s41_s9 = ssub.s32 %s1519_s30, %s1957_s13 }
  0x2c   : > { %s1708_s8 = scalar_select %p68_p12, %s1491_s23, %s70_s19  }
  0x2d   : > { %p42_p1 = scmp.eq.s32.totalorder %s41_s9, 0  ;;  %s1104_s20 = sshll.u32 %s256_s21, 3 }
  0x2e   : > { %s1105_s0 = sshll.u32 %s1515_s29, 3  ;;  %s1933_s10 = sadd.s32 1, %s1503_s26 }
  0x2f   : > { %s1716_s16 = scalar_select %p42_p1, %s1503_s26, %s1933_s10  }
  0x30   : > { %s1934_s1 = sld [smem:[#allocation22_spill]]  ;;  %s260_s15 = scalar_lea.vmem [#allocation7], %s1104_s20 }
  0x31   : > { %s268_s28 = sshll.u32 %s260_s15, 4  ;;  %p1201_p3 = pnand %p1208_p10, %p1694_p7  ;;  %s269_s28 = int_to_ptr.vmem [resolvable:$true] %s268_s28 }
  0x32   : > { %s257_s19 = scalar_lea.sflag [#allocation8], %s256_s21  ;;  %s1728_s10 = sand.u32 (!%p1675_p0), 1, %s1499_s25  }
  0x33   : > { %s312_s9 = scalar_lea.sflag (!%p1675_p0), [#allocation5], %s1728_s10 }
  0x34   : > { %309 = sbr.rel (%p1675_p0) target bundleno = 1788 (0x6fc), region = 44 }
  0x36   : > { %s264_s6 = scalar_lea.hbm %s1934_s1, %s1105_s0  ;;  %s1107_s0 = sshll.u32 (!%p1675_p0), %s1728_s10, 3 }
  0x37   : > { %s266_s5 = sshll.u32 %s264_s6, 4  ;;  %s315_s15 = scalar_lea.vmem (!%p1675_p0), [#allocation4], %s1107_s0  ;;  %s267_s5 = int_to_ptr.hbm [resolvable:$true] %s266_s5 }
  0x38   : > { %1203 = dma.hbm_to_vmem [thread:$0]  (!%p1201_p3), %s267_s5, 128, %s269_s28, %s257_s19  }
  0x39   : > { %1470 = dma.done.wait (%p1651_p6), %s312_s9, 128  }
  0x3a   : > { %1472 = vsyncadd (%p1651_p6), %s312_s9, 4294967168  ;;  %s321_s5 = sand.u32 1, %s1487_s22  }
  0x3b   : > { %s1737_s6 = sshll.u32 %s321_s5, 3  ;;  %s322_s28 = scalar_lea.sflag [#allocation8], %s321_s5 }
  0x3c   : > { %1474 = dma.done.wait (%p1700_p13), %s322_s28, 128  }
  0x3d   : > { %1476 = vsyncadd (%p1700_p13), %s322_s28, 4294967168  ;;  %p380_p10 = scmp.lt.s32.totalorder %s1507_s27, 1  ;;  %s1935_s30 = sld [smem:[#allocation23_spill]] }
  0x3e   : > { %p1118_p6 = scmp.ne.s32.totalorder %s1507_s27, 0 }
  0x3f   : > { %s381_s11 = scalar_select %p380_p10, %s1507_s27, 1 }
  0x40   : > { %404 = sbr.rel (%p1118_p6) target bundleno = 71 (0x47), region = 56 }
  0x41   : > { %s1177_s21 = sshll.u32 %s381_s11, 4  ;;  %s1180_s14 = sshll.u32 %s381_s11, 5 }
  0x42   : > { %s384_s24 = scalar_lea.vmem %s1897_s2, %s1177_s21  ;;  %s1752_s5 = scalar_lea.vmem %s1898_s3, %s1177_s21 }
  0x43   : > { %s1757_s17 = scalar_lea.vmem %s1899_s4, %s1177_s21  ;;  %s1762_s29 = scalar_lea.vmem %s1935_s30, %s1180_s14 }
  0x44   : > { %s1764_s11 = scalar_lea.vmem [#allocation9], %s1107_s0 }
  0x45   : > { %v405_v0 = vld [vmem:[%s315_s15] sm:$0xff]  ;;  %vm406_vm0 = vcmask 261120  }
  0x46   : > { %407 = vst.msk [vmem:[#allocation2] sm:$0xff] %vm406_vm0, %v405_v0 }
  0x47 PF: > { %vm410_vm1 = vcmask 261120   ;;  %v1525_v5 = vmov 32.0   ;;  %v1182_v11 = vld [vmem:[%s384_s24 + $0x8] sm:$0xff]  ;;  %v1181_v13 = vld [vmem:[%s384_s24] sm:$0xff]  ;;  %s1936_s1 = scalar_lea.vmem [#allocation7], %s1737_s6  ;;  %s1526_s30 = smov 104  }
  0x48   : > { %1313 = vrcp.f32 %v1525_v5  ;;  %472 = vmatpush.bf16.msra.mxu0 %v1182_v11  ;;  %v1780_v26 = vld [vmem:[%s1936_s1] sm:$0xff]  ;;  %s1527_s13 = smov 120   ;;  %s1528_s0 = smov 96   ;;  %vm485_vm6 = vcmask 64512   ;;  %vm523_vm7 = vcmask 1043456   ;;  %vm602_vm8 = vcmask 130112  }
  0x49   : > { %v442_v29 = vperm.slane %v1780_v26, 0  ;;  %v444_v32 = vperm.slane %v1780_v26, 1  ;;  %s1529_s15 = smov 72   ;;  %s1530_s6 = smov 88   ;;  %vm665_vm9 = vcmask 195712   ;;  %vm728_vm10 = vcmask 261312  }
  0x4a   : > { %s1531_s18 = smov 112   ;;  %s1532_s21 = smov 80  }
  0x4b   : > { %s1533_s14 = smov 64   ;;  %s1534_s20 = smov 56  }
  0x4c   : > { %473 = vmatpush.bf16.msra.mxu0 %v1181_v13  ;;  %s1535_s12 = smov 40   ;;  %s1536_s24 = smov 48  }
  0x4d   : > { %v1767_v1 = vld [vmem:[#allocation2] sm:$0xff]  ;;  %s1537_s19 = smov 8   ;;  %s1538_s9 = smov 16  }
  0x4e   : > { %v411_v2 = vsel %vm410_vm1, %v1767_v1, 0.0  ;;  %v422_v3 = vmul.f32 %v1767_v1, %v1767_v1  ;;  %v1314_v6 = vpop.eup %1313  ;;  %s1539_s28 = smov 24   ;;  %p1172_p0 = scmp.ne.s32.totalorder %s1507_s27, 1 }
  0x4f   : > { %412 = vadd.xlane.f32.xlu0 %v411_v2  ;;  %v415_v7 = vmul.f32 32.0, %v1314_v6  ;;  %vm419_vm2 = vweird.f32 %v1314_v6 }
  0x50   : > { %v423_v4 = vsel %vm410_vm1, %v422_v3, 0.0 }
  0x51   : > { %v416_v8 = vsub.f32 1.0, %v415_v7 }
  0x53   : > { %v417_v9 = vmul.f32 %v1314_v6, %v416_v8 }
  0x55   : > { %v418_v10 = vadd.f32 %v1314_v6, %v417_v9 }
  0x57   : > { %424 = vadd.xlane.f32.xlu0 %v423_v4  ;;  %v1774_v14 = vsel %vm419_vm2, %v1314_v6, %v418_v10 }
  0xc2   : > { %v413_v12 = vpop.xlane.xlu0 %412 }
  0xc3   : > { %v421_v15 = vmul.f32 %v1774_v14, %v413_v12 }
  0xc5   : > { %v427_v17 = vmul.f32 %v421_v15, %v421_v15  ;;  %v429_v28 = vsub.f32 %v1767_v1, %v421_v15 }
  0xca   : > { %v425_v16 = vpop.xlane.xlu0 %424 }
  0xcb   : > { %v426_v18 = vmul.f32 %v425_v16, %v1774_v14 }
  0xcd   : > { %v428_v19 = vsub.f32 %v426_v18, %v427_v17 }
  0xcf   : > { %v430_v20 = vadd.f32 1e-05, %v428_v19 }
  0xd1   : > { %1315 = vrsqrt.f32 %v430_v20  ;;  %vm437_vm4 = vweird.f32 %v430_v20 }
  0xd7   : > { %v1316_v21 = vpop.eup %1315 }
  0xd8   : > { %v432_v22 = vmul.f32 %v1316_v21, %v430_v20  ;;  %vm438_vm3 = vweird.f32 %v1316_v21 }
  0xd9   : > { %vm439_vm5 = vmor %vm437_vm4, %vm438_vm3  ;;  %vm906_vm3 = vcmask 523264  }
  0xda   : > { %v433_v23 = vmul.f32 %v1316_v21, %v432_v22 }
  0xdc   : > { %v434_v24 = vmul.f32 0.5, %v433_v23 }
  0xde   : > { %v435_v25 = vsub.f32 1.5, %v434_v24 }
  0xe0   : > { %v436_v27 = vmul.f32 %v1316_v21, %v435_v25 }
  0xe2   : > { %v440_v30 = vsel %vm439_vm5, %v1316_v21, %v436_v27 }
  0xe3   : > { %v441_v31 = vmul.f32 %v440_v30, %v429_v28 }
  0xe5   : > { %v443_v33 = vmul.f32 %v442_v29, %v441_v31 }
  0xe7   : > { %v445_v34 = vadd.f32 %v444_v32, %v443_v33 }
  0xe9   : > { %v446_v35 = vpack.c.bf16 %v445_v34, %v445_v34 }
  0xeb   : > { %1127 = vmatmul.msk.bf16.vlgmr.msra.gmra.mxu0 %vm410_vm1, %v446_v35 }
 0x168   : > { %v475_v36 = vpop.f32.mrf.mxu0 }
 0x169   : > { %v479_v37 = vpack.c.bf16 %v475_v36, %v475_v36 }
 0x16b   : > { %v481_v38 = vunpack.c.l.b16 %v479_v37 }
 0x16d   : > { %v482_v39 = vpack.c.b16 %v481_v38, %v481_v38 }
 0x16f   : > { %667 = vrot.lane.b32.xlu0 %v482_v39, %s1526_s30  ;;  %541 = vrot.lane.b32.xlu2 %v482_v39, %s1527_s13 }
 0x170   : > { %483 = vrot.lane.b32.xlu1 %v482_v39, %s1528_s0  ;;  %v477_v40 = vpop.f32.mrf.mxu0 }
 0x177   : > { %669 = vrot.lane.b32.xlu2 %v482_v39, %s1529_s15 }
 0x178   : > { %543 = vrot.lane.b32.xlu1 %v482_v39, %s1530_s6 }
 0x17f   : > { %604 = vrot.lane.b32.xlu2 %v482_v39, %s1531_s18 }
 0x180   : > { %606 = vrot.lane.b32.xlu1 %v482_v39, %s1532_s21 }
 0x1c9   : > { %v542_v41 = vpop.permute.xlu2 %541 }
 0x1d1   : > { %v670_v44 = vpop.permute.xlu2 %669 }
 0x1d2   : > { %v675_v47 = vsel %vm485_vm6, %v670_v44, 0 }
 0x1d9   : > { %v605_v50 = vpop.permute.xlu2 %604 }
 0x1e1   : > { %v668_v51 = vpop.permute.xlu0 %667 }
 0x1e2   : > { %v484_v42 = vpop.permute.xlu1 %483 }
 0x1e3   : > { %v490_v43 = vsel %vm485_vm6, %v484_v42, 0 }
 0x1e4   : > { %499 = vmatpush.bf16.xpose.msra.mxu1 %v490_v43 }
 0x1ea   : > { %v544_v45 = vpop.permute.xlu1 %543 }
 0x1eb   : > { %1128 = vmatmul.msk.bf16.vlgmr.msra.gmra.mxu1 %vm485_vm6, %v479_v37  ;;  %v549_v46 = vsel %vm485_vm6, %v544_v45, 0 }
 0x1ec   : > { %558 = vmatpush.bf16.xpose.msra.mxu3 %v549_v46 }
 0x1f2   : > { %v607_v48 = vpop.permute.xlu1 %606 }
 0x1f3   : > { %1130 = vmatmul.msk.bf16.vlgmr.msra.gmra.mxu3 %vm485_vm6, %v542_v41  ;;  %v612_v49 = vsel %vm485_vm6, %v607_v48, 0 }
 0x1f4   : > { %684 = vmatpush.bf16.xpose.msrb.mxu3 %v675_v47  ;;  %621 = vmatpush.bf16.xpose.msrb.mxu0 %v612_v49 }
 0x1fb   : > { %1132 = vmatmul.msk.bf16.vlgmr.msrb.gmra.mxu0 %vm485_vm6, %v605_v50 }
 0x203   : > { %1134 = vmatmul.msk.bf16.vlgmr.msrb.gmra.mxu3 %vm485_vm6, %v668_v51 }
 0x268   : > { %v501_v52 = vpop.f32.mrf.mxu1 }
 0x269   : > { %v505_v53 = vmul.f32 0.35355338, %v501_v52 }
 0x26b   : > { %v506_v54 = vsel %vm485_vm6, %v505_v53, -inf }
 0x26c   : > { %507 = vmax.xlane.f32.xlu1 %v506_v54 }
 0x270   : > { %v503_v55 = vpop.f32.mrf.mxu1 }
 0x276   : > { %v560_v56 = vpop.f32.mrf.mxu3 }
 0x277   : > { %v564_v57 = vmul.f32 0.35355338, %v560_v56 }
 0x278   : > { %v623_v58 = vpop.f32.mrf.mxu0 }
 0x279   : > { %v565_v59 = vsel %vm485_vm6, %v564_v57, -inf  ;;  %v627_v60 = vmul.f32 0.35355338, %v623_v58 }
 0x27a   : > { %566 = vmax.xlane.f32.xlu2 %v565_v59  ;;  %v1184_v59 = vld [vmem:[%s1752_s5 + $0x8] sm:$0xff] }
 0x27b   : > { %v628_v63 = vsel %vm485_vm6, %v627_v60, -inf  ;;  %758 = vmatpush.bf16.msra.mxu0 %v1184_v59 }
 0x27e   : > { %v562_v61 = vpop.f32.mrf.mxu3 }
 0x280   : > { %v625_v62 = vpop.f32.mrf.mxu0 }
 0x282   : > { %629 = vmax.xlane.f32.xlu2 %v628_v63 }
 0x286   : > { %v686_v0 = vpop.f32.mrf.mxu3 }
 0x287   : > { %v690_v2 = vmul.f32 0.35355338, %v686_v0 }
 0x289   : > { %v691_v3 = vsel %vm485_vm6, %v690_v2, -inf }
 0x28a   : > { %692 = vmax.xlane.f32.xlu0 %v691_v3  ;;  %v736_v3 = vperm.slane %v1780_v26, 2 }
 0x28e   : > { %v688_v4 = vpop.f32.mrf.mxu3 }
 0x29a   : > { %518 = vrot.lane.b32.xlu2 %v482_v39, %s1533_s14 }
 0x29e   : > { %577 = vrot.lane.b32.xlu0 %v482_v39, %s1534_s20 }
 0x2a2   : > { %703 = vrot.lane.b32.xlu2 %v482_v39, %s1535_s12 }
 0x2a6   : > { %640 = vrot.lane.b32.xlu0 %v482_v39, %s1536_s24 }
 0x2df   : > { %v508_v5 = vpop.xlane.xlu1 %507 }
 0x2e0   : > { %v509_v6 = vsub.f32 %v505_v53, %v508_v5 }
 0x2e2   : > { %v510_v7 = vmul.f32 1.442695, %v509_v6 }
 0x2e4   : > { %1317 = vpow2.f32 %v510_v7 }
 0x2ea   : > { %v1318_v8 = vpop.eup %1317 }
 0x2eb   : > { %v512_v9 = vsel %vm485_vm6, %v1318_v8, 0.0 }
 0x2ec   : > { %513 = vadd.xlane.f32.xlu1 %v512_v9 }
 0x2ed   : > { %v567_v10 = vpop.xlane.xlu2 %566 }
 0x2ee   : > { %v568_v11 = vsub.f32 %v564_v57, %v567_v10 }
 0x2f0   : > { %v569_v12 = vmul.f32 1.442695, %v568_v11  ;;  %v1186_v11 = vld [vmem:[%s1757_s17 + $0x8] sm:$0xff] }
 0x2f2   : > { %1319 = vpow2.f32 %v569_v12  ;;  %v1185_v12 = vld [vmem:[%s1757_s17] sm:$0xff] }
 0x2f5   : > { %v630_v13 = vpop.xlane.xlu2 %629 }
 0x2f6   : > { %v631_v21 = vsub.f32 %v627_v60, %v630_v13  ;;  %v1183_v60 = vld [vmem:[%s1752_s5] sm:$0xff] }
 0x2f7   : > { %759 = vmatpush.bf16.msra.mxu0 %v1183_v60 }
 0x2f8   : > { %v1320_v15 = vpop.eup %1319  ;;  %v632_v23 = vmul.f32 1.442695, %v631_v21 }
 0x2f9   : > { %v571_v16 = vsel %vm485_vm6, %v1320_v15, 0.0 }
 0x2fa   : > { %572 = vadd.xlane.f32.xlu1 %v571_v16 }
 0x2fd   : > { %v693_v17 = vpop.xlane.xlu0 %692  ;;  %v519_v18 = vpop.permute.xlu2 %518 }
 0x2fe   : > { %v694_v19 = vsub.f32 %v690_v2, %v693_v17  ;;  %v525_v20 = vsel %vm523_vm7, %v519_v18, 0 }
 0x2ff   : > { %534 = vmatpush.bf16.msra.mxu2 %v525_v20 }
 0x300   : > { %v695_v22 = vmul.f32 1.442695, %v694_v19 }
 0x302   : > { %1321 = vpow2.f32 %v695_v22 }
 0x303   : > { %1323 = vpow2.f32 %v632_v23 }
 0x305   : > { %v704_v36 = vpop.permute.xlu2 %703 }
 0x306   : > { %v709_v38 = vsel %vm523_vm7, %v704_v36, 0 }
 0x308   : > { %v1322_v24 = vpop.eup %1321 }
 0x309   : > { %v697_v25 = vsel %vm485_vm6, %v1322_v24, 0.0  ;;  %v1324_v27 = vpop.eup %1323 }
 0x30a   : > { %698 = vadd.xlane.f32.xlu1 %v697_v25  ;;  %v634_v29 = vsel %vm485_vm6, %v1324_v27, 0.0 }
 0x310   : > { %v578_v28 = vpop.permute.xlu0 %577 }
 0x311   : > { %v583_v30 = vsel %vm523_vm7, %v578_v28, 0  ;;  %v790_v28 = vperm.slane %v1780_v26, 3 }
 0x312   : > { %635 = vadd.xlane.f32.xlu1 %v634_v29  ;;  %592 = vmatpush.bf16.msrb.mxu2 %v583_v30 }
 0x318   : > { %v641_v31 = vpop.permute.xlu0 %640 }
 0x319   : > { %v646_v32 = vsel %vm523_vm7, %v641_v31, 0 }
 0x31a   : > { %655 = vmatpush.bf16.msrb.mxu1 %v646_v32 }
 0x31e   : > { %821 = vmatpush.bf16.msra.mxu1 %v1186_v11 }
 0x322   : > { %822 = vmatpush.bf16.msra.mxu1 %v1185_v12 }
 0x35f   : > { %v514_v33 = vpop.xlane.xlu1 %513 }
 0x360   : > { %1325 = vrcp.f32 %v514_v33 }
 0x366   : > { %v1326_v34 = vpop.eup %1325 }
 0x367   : > { %v516_v35 = vmul.f32 %v1326_v34, %v1318_v8  ;;  %v799_v34 = vperm.slane %v1780_v26, 5 }
 0x369   : > { %v517_v37 = vpack.c.bf16 %v516_v35, %v516_v35 }
 0x36b   : > { %1129 = vmatmul.msk.bf16.vlgmr.msra.gmra.mxu2 %vm485_vm6, %v517_v37 }
 0x36c   : > { %718 = vmatpush.bf16.msra.mxu2 %v709_v38 }
 0x36d   : > { %v573_v39 = vpop.xlane.xlu1 %572 }
 0x36e   : > { %1327 = vrcp.f32 %v573_v39 }
 0x374   : > { %v1328_v40 = vpop.eup %1327 }
 0x375   : > { %v575_v41 = vmul.f32 %v1328_v40, %v1320_v15 }
 0x377   : > { %v576_v42 = vpack.c.bf16 %v575_v41, %v575_v41  ;;  %v1190_v41 = vld [vmem:[%s1762_s29 + $0x18] sm:$0xff] }
 0x378   : > { %914 = vmatpush.bf16.msra.mxu3 %v1190_v41 }
 0x37b   : > { %1131 = vmatmul.msk.bf16.vlgmr.msrb.gmra.mxu2 %vm485_vm6, %v576_v42 }
 0x37d   : > { %v699_v43 = vpop.xlane.xlu1 %698 }
 0x37e   : > { %1329 = vrcp.f32 %v699_v43 }
 0x384   : > { %v1330_v44 = vpop.eup %1329 }
 0x385   : > { %v701_v45 = vmul.f32 %v1330_v44, %v1322_v24  ;;  %v636_v46 = vpop.xlane.xlu1 %635 }
 0x386   : > { %1331 = vrcp.f32 %v636_v46  ;;  %v1189_v46 = vld [vmem:[%s1762_s29 + $0x10] sm:$0xff] }
 0x387   : > { %v702_v47 = vpack.c.bf16 %v701_v45, %v701_v45  ;;  %915 = vmatpush.bf16.msra.mxu3 %v1189_v46 }
 0x38b   : > { %1135 = vmatmul.msk.bf16.vlgmr.msra.gmra.mxu2 %vm485_vm6, %v702_v47 }
 0x38c   : > { %v1332_v48 = vpop.eup %1331 }
 0x38d   : > { %v638_v49 = vmul.f32 %v1332_v48, %v1324_v27 }
 0x38f   : > { %v639_v50 = vpack.c.bf16 %v638_v49, %v638_v49 }
 0x391   : > { %1133 = vmatmul.msk.bf16.vlgmr.msrb.gmra.mxu1 %vm485_vm6, %v639_v50 }
 0x3ee   : > { %v536_v51 = vpop.f32.mrf.mxu2 }
 0x3ef   : > { %540 = vst.msk [vmem:[#allocation3] sm:$0xff] %vm485_vm6, %v536_v51  ;;  %v1188_v51 = vld [vmem:[%s1762_s29 + $0x8] sm:$0xff] }
 0x3f0   : > { %916 = vmatpush.bf16.msra.mxu3 %v1188_v51 }
 0x3f6   : > { %v538_v52 = vpop.f32.mrf.mxu2 }
 0x3fe   : > { %v594_v53 = vpop.f32.mrf.mxu2 }
 0x3ff   : > { %599 = vrot.lane.b32.xlu1 %v594_v53, %s1537_s19 }
 0x406   : > { %v596_v54 = vpop.f32.mrf.mxu2 }
 0x40e   : > { %v657_v55 = vpop.f32.mrf.mxu1  ;;  %v720_v56 = vpop.f32.mrf.mxu2 }
 0x40f   : > { %662 = vrot.lane.b32.xlu2 %v657_v55, %s1538_s9  ;;  %725 = vrot.lane.b32.xlu0 %v720_v56, %s1539_s28  ;;  %v1187_v55 = vld [vmem:[%s1762_s29] sm:$0xff] }
 0x410   : > { %917 = vmatpush.bf16.msra.mxu3 %v1187_v55 }
 0x416   : > { %v659_v57 = vpop.f32.mrf.mxu1  ;;  %v722_v58 = vpop.f32.mrf.mxu2 }
 0x469   : > { %v663_v62 = vpop.permute.xlu2 %662 }
 0x471   : > { %v600_v61 = vpop.permute.xlu1 %599 }
 0x472   : > { %603 = vst.msk [vmem:[#allocation3] sm:$0xff] %vm602_vm8, %v600_v61 }
 0x473   : > { %666 = vst.msk [vmem:[#allocation3] sm:$0xff] %vm665_vm9, %v663_v62 }
 0x481   : > { %v726_v63 = vpop.permute.xlu0 %725 }
 0x482   : > { %729 = vst.msk [vmem:[#allocation3] sm:$0xff] %vm728_vm10, %v726_v63 }
 0x489   : > { %v730_v0 = vld [vmem:[#allocation3] sm:$0xff] }
 0x48a   : > { %v731_v2 = vpack.c.bf16 %v730_v0, %v730_v0 }
 0x48c   : > { %1144 = vmatmul.msk.bf16.vlgmr.msra.gmra.mxu0 %vm410_vm1, %v731_v2 }
 0x509   : > { %v761_v4 = vpop.f32.mrf.mxu0 }
 0x50a   : > { %v762_v5 = vadd.f32 %v761_v4, %v736_v3 }
 0x50c   : > { %v1816_v6 = vadd.f32 %v762_v5, %v1767_v1 }
 0x50e   : > { %v766_v7 = vsel %vm410_vm1, %v1816_v6, 0.0  ;;  %v770_v8 = vmul.f32 %v1816_v6, %v1816_v6 }
 0x50f   : > { %767 = vadd.xlane.f32.xlu2 %v766_v7 }
 0x510   : > { %v771_v9 = vsel %vm410_vm1, %v770_v8, 0.0 }
 0x511   : > { %v763_v10 = vpop.f32.mrf.mxu0  ;;  %772 = vadd.xlane.f32.xlu0 %v771_v9 }
 0x582   : > { %v768_v13 = vpop.xlane.xlu2 %767 }
 0x583   : > { %v769_v15 = vmul.f32 %v768_v13, %v1774_v14 }
 0x584   : > { %v773_v1 = vpop.xlane.xlu0 %772 }
 0x585   : > { %v775_v16 = vmul.f32 %v769_v15, %v769_v15  ;;  %v774_v17 = vmul.f32 %v773_v1, %v1774_v14  ;;  %v777_v27 = vsub.f32 %v1816_v6, %v769_v15  ;;  %v792_v14 = vperm.slane %v1780_v26, 4 }
 0x587   : > { %v776_v18 = vsub.f32 %v774_v17, %v775_v16 }
 0x589   : > { %v778_v19 = vadd.f32 1e-05, %v776_v18 }
 0x58b   : > { %1333 = vrsqrt.f32 %v778_v19  ;;  %vm785_vm12 = vweird.f32 %v778_v19 }
 0x591   : > { %v1334_v20 = vpop.eup %1333 }
 0x592   : > { %v780_v21 = vmul.f32 %v1334_v20, %v778_v19  ;;  %vm786_vm11 = vweird.f32 %v1334_v20 }
 0x593   : > { %vm787_vm13 = vmor %vm785_vm12, %vm786_vm11 }
 0x594   : > { %v781_v22 = vmul.f32 %v1334_v20, %v780_v21 }
 0x596   : > { %v782_v23 = vmul.f32 0.5, %v781_v22 }
 0x598   : > { %v783_v24 = vsub.f32 1.5, %v782_v23 }
 0x59a   : > { %v784_v25 = vmul.f32 %v1334_v20, %v783_v24 }
 0x59c   : > { %v788_v29 = vsel %vm787_vm13, %v1334_v20, %v784_v25  ;;  %v881_v20 = vperm.slane %v1780_v26, 6 }
 0x59d   : > { %v789_v30 = vmul.f32 %v788_v29, %v777_v27 }
 0x59f   : > { %v791_v31 = vmul.f32 %v790_v28, %v789_v30 }
 0x5a1   : > { %v793_v32 = vadd.f32 %v792_v14, %v791_v31 }
 0x5a3   : > { %v794_v33 = vpack.c.bf16 %v793_v32, %v793_v32 }
 0x5a5   : > { %1153 = vmatmul.msk.bf16.vlgmr.msra.gmra.mxu1 %vm410_vm1, %v794_v33 }
 0x622   : > { %v824_v35 = vpop.f32.mrf.mxu1 }
 0x623   : > { %v825_v36 = vadd.f32 %v824_v35, %v799_v34 }
 0x625   : > { %v829_v37 = vmul.f32 0.70710677, %v825_v36  ;;  %v828_v16 = vmul.f32 0.5, %v825_v36 }
 0x627   : > { %v830_v38 = vmul.f32 %v829_v37, %v829_v37 }
 0x629   : > { %v831_v39 = vmin.f32 %v830_v38, 16.0 }
 0x62a   : > { %v826_v40 = vpop.f32.mrf.mxu1 }
 0x62b   : > { %v832_v42 = vmul.f32 2.1237322e-06, %v831_v39  ;;  %v843_v43 = vmul.f32 3.8918573e-05, %v831_v39 }
 0x62d   : > { %v833_v44 = vadd.f32 0.00028619796, %v832_v42  ;;  %v844_v45 = vadd.f32 0.001143296, %v843_v43 }
 0x62f   : > { %v834_v47 = vmul.f32 %v833_v44, %v831_v39  ;;  %v845_v48 = vmul.f32 %v844_v45, %v831_v39 }
 0x631   : > { %v846_v49 = vadd.f32 0.014752088, %v845_v48  ;;  %v835_v50 = vadd.f32 0.0036580483, %v834_v47 }
 0x633   : > { %v847_v52 = vmul.f32 %v846_v49, %v831_v39  ;;  %v836_v54 = vmul.f32 %v835_v50, %v831_v39 }
 0x635   : > { %v848_v53 = vadd.f32 0.112945676, %v847_v52  ;;  %v837_v58 = vadd.f32 0.05243302, %v836_v54 }
 0x637   : > { %v849_v56 = vmul.f32 %v848_v53, %v831_v39  ;;  %v838_v61 = vmul.f32 %v837_v58, %v831_v39 }
 0x639   : > { %v850_v57 = vadd.f32 0.4994258, %v849_v56  ;;  %v839_v62 = vadd.f32 0.18741608, %v838_v61 }
 0x63b   : > { %v851_v59 = vmul.f32 %v850_v57, %v831_v39  ;;  %v840_v0 = vmul.f32 %v839_v62, %v831_v39 }
 0x63d   : > { %v852_v60 = vadd.f32 1.0, %v851_v59  ;;  %v841_v5 = vadd.f32 1.1283791, %v840_v0 }
 0x63f   : > { %1335 = vrcp.f32 %v852_v60  ;;  %v864_v4 = vand.u32 2147483648, %v852_v60  ;;  %v862_v8 = vand.u32 2147483647, %v852_v60  ;;  %vm858_vm15 = vweird.f32 %v852_v60 }
 0x640   : > { %v842_v11 = vmul.f32 %v841_v5, %v829_v37 }
 0x641   : > { %v865_v10 = vor.u32 1.1754944e-38, %v864_v4  ;;  %vm863_vm2 = vcmp.eq.f32.partialorder %v862_v8, 8.507059e+37 }
 0x645   : > { %v1336_v63 = vpop.eup %1335 }
 0x646   : > { %v854_v2 = vmul.f32 %v1336_v63, %v852_v60  ;;  %vm859_vm14 = vweird.f32 %v1336_v63 }
 0x647   : > { %vm860_vm0 = vmor %vm858_vm15, %vm859_vm14 }
 0x648   : > { %v855_v3 = vsub.f32 1.0, %v854_v2 }
 0x64a   : > { %v856_v7 = vmul.f32 %v1336_v63, %v855_v3 }
 0x64c   : > { %v857_v9 = vadd.f32 %v1336_v63, %v856_v7 }
 0x64e   : > { %v861_v12 = vsel %vm860_vm0, %v1336_v63, %v857_v9 }
 0x64f   : > { %v866_v13 = vsel %vm863_vm2, %v865_v10, %v861_v12 }
 0x650   : > { %v867_v15 = vmul.f32 %v866_v13, %v842_v11 }
 0x652   : > { %v1154_v1 = vclamps-f32 %v867_v15, 1.0 }
 0x654   : > { %v870_v17 = vadd.f32 1.0, %v1154_v1 }
 0x656   : > { %v871_v18 = vmul.f32 %v870_v17, %v828_v16 }
 0x658   : > { %v872_v19 = vpack.c.bf16 %v871_v18, %v871_v18 }
 0x65a   : > { %1171 = vmatmul.msk.bf16.vlgmr.msra.gmra.mxu3 %vm906_vm3, %v872_v19 }
 0x6dd   : > { %v919_v21 = vpop.f32.mrf.mxu3 }
 0x6de   : > { %v920_v22 = vadd.f32 %v919_v21, %v881_v20 }
 0x6e0   : > { %v923_v23 = vadd.f32 %v920_v22, %v1816_v6 }
 0x6e1   : > { %928 = sbr.rel (%p1172_p0) target bundleno = 1767 (0x6e7), region = 60 }
 0x6e2   : > { %924 = vst.msk [vmem:[#allocation2] sm:$0xff] %vm410_vm1, %v923_v23 }
 0x6e5   : > { %v921_v24 = vpop.f32.mrf.mxu3 }
 0x6e6   : > { %929 = vst.msk [vmem:[%s1764_s11] sm:$0xff] %vm410_vm1, %v923_v23 }
 0x6e7 PF: > { %s1937_s29 = sld [smem:[#allocation14_spill]]  ;;  %s943_s15 = sshll.u32 %s1764_s11, 4  ;;  %s944_s15 = int_to_ptr.vmem [resolvable:$true] %s943_s15 }
 0x6e8   : > { %s1939_s13 = sld [smem:[#allocation24_spill]]  ;;  %s931_s18 = scalar_lea.sflag [#allocation6], %s1728_s10 }
 0x6ed   : > { %s1174_s17 = sshll.u32 %s1937_s29, 3 }
 0x6ee   : > { %s941_s0 = scalar_lea.hbm %s1939_s13, %s1174_s17  ;;  %s1417_s12 = scalar_lea.hbm %s1939_s13, 16 }
 0x6ef   : > { %s945_s6 = sshll.u32 %s941_s0, 4  ;;  %s946_s6 = int_to_ptr.hbm [resolvable:$true] %s945_s6 }
 0x6f0   : > { %s1411_s27 = sshra.s32 %s946_s6, 4  ;;  %s1412_s27 = int_to_ptr.hbm [resolvable:$true] %s1411_s27 }
 0x6f1   : > { %s1413_s21 = scalar_lea.hbm %s1412_s27, 8  ;;  %p1418_p7 = scmp.lt.s32.totalorder %s1412_s27, %s1939_s13 }
 0x6f2   : > { %p1414_p2 = scmp.ne.s32.totalorder %s1412_s27, %s1413_s21  ;;  %p1419_p11 = scmp.lt.s32.totalorder %s1417_s12, %s1413_s21 }
 0x6f4   : > { %p1415_p5 = pnand %p1414_p2, %p1655_p8  ;;  %p1420_p12 = por %p1419_p11, %p1418_p7 }
 0x6f6   : > { %p1416_p4 = pneg %p1415_p5 }
 0x6f8   : > { %p1421_p13 = pnand %p1420_p12, %p1416_p4 }
 0x6fa   : > { %1424 = shalt.err (!%p1421_p13)
}
 0x6fb   : > { %1195 = dma.vmem_to_hbm [thread:$0]  (%p1655_p8), %s944_s15, 128, %s946_s6, %s931_s18  }
 0x6fc PF: > { %s1940_s10 = sld [smem:[#allocation13_spill]]  ;;  %p1209_p1 = scmp.ge.s32.totalorder %s1523_s7, 2 }
 0x6fe   : > { %p1205_p3 = pnand %p1209_p1, %p1659_p9 }
 0x700   : > { %p1206_p10 = pneg %p1205_p3 }
 0x702   : > { %s957_s9 = sand.u32 1, %s1940_s10  }
 0x703   : > { %s958_s28 = scalar_lea.sflag [#allocation6], %s957_s9 }
 0x704   : > { %1478 = dma.done.wait (%p1206_p10), %s958_s28, 128  }
 0x705   : > { %1480 = vsyncadd (%p1206_p10), %s958_s28, 4294967168  ;;  %s25_s7 = sadd.s32 1, %s1523_s7   ;;  %s1942_s27 = sld [smem:[#allocation15_spill]] }
 0x706   : > { %p22_p6 = scmp.ge.s32.totalorder %s25_s7, 6   ;;  %s1943_s28 = sld [smem:[#allocation16_spill]] }
 0x707   : > { %s1944_s29 = sld [smem:[#allocation19_spill]]  ;;  %s1946_s21 = smov %s1487_s22 }
 0x708   : > { %s1945_s30 = sld [smem:[#allocation20_spill]]  ;;  %s1947_s22 = smov %s1491_s23 }
 0x709   : > { %s1948_s23 = smov %s1708_s8  ;;  %s1949_s24 = smov %s1499_s25 }
 0x70a   : > { %s1950_s25 = smov %s1503_s26  ;;  %s1951_s26 = smov %s1716_s16 }
 0x70b   :  { %24 = sbr.rel (!%p22_p6) target bundleno = 16 (0x10), region = 122 }
 0x710   :  { %964 = vsyncpa [#allocation5], 1 }
 0x711   :  { %966 = vsyncpa [#allocation5 + $0x1], 1 }
 0x712   :  { %967 = vsyncpa [#allocation8], 1 }
 0x713   :  { %969 = vsyncpa [#allocation8 + $0x1], 1 }
 0x714   :  { %970 = vsyncpa [#allocation6], 1 }
 0x715   :  { %972 = vsyncpa [#allocation6 + $0x1], 1 }

</bundles_post_ra>
